<compile_context>
chip_gen: v7x
topology: tpu7x:2x2x1
jax: 0.10.0
libtpu: 0.0.40
codegen_flags: <defaults>
</compile_context>

<pallas_src>
import functools
import math

import jax
import jax.numpy as jnp
from jax.experimental import pallas as pl
from jax.experimental.pallas import tpu as pltpu


LANE = 128  # lane-dense compute slab width for the class dimension


def _round_up(x: int, m: int) -> int:
    return ((x + m - 1) // m) * m


def _pick_tile_b(b8: int, max_tile_b: int) -> int:
    """Largest multiple of 8 dividing b8, capped at max_tile_b and (for b8>=16)
    at b8//2 so the grid has >= 2 steps (keeps v7x's 2nd TensorCore busy)."""
    cap = min(max_tile_b, b8 if b8 < 16 else max(8, b8 // 2))
    t = (cap // 8) * 8
    while t > 8:
        if b8 % t == 0:
            return t
        t -= 8
    return 8


def _linear_softmax_kernel(x_ref, w_ref, b_ref, o_ref):
    # x_ref: (TILE_B, F) f32   -- streamed, cast to bf16 here (hidden under DMA)
    # w_ref: (F, LANE) bf16    -- resident, zero-padded past `outputs`
    # b_ref: (1, LANE) f32     -- resident, -1e30 past `outputs`
    # o_ref: (TILE_B, outputs) f32 -- narrow HBM-facing output
    logits = jnp.dot(x_ref[...].astype(jnp.bfloat16), w_ref[...],
                     preferred_element_type=jnp.float32)      # MXU, f32 accum
    logits = logits + b_ref[...]                              # f32 bias add
    # Numerically stable softmax over the lane axis; padded lanes carry -1e30
    # logits -> exp == 0, so they do not perturb max / sum.
    m = jnp.max(logits, axis=-1, keepdims=True)
    e = jnp.exp(logits - m)
    denom = jnp.sum(e, axis=-1, keepdims=True)
    probs = e / denom                                         # exact divide
    o_ref[...] = probs[:, :o_ref.shape[-1]].astype(o_ref.dtype)


@functools.partial(jax.jit, static_argnames=("max_tile_b",))
def basic_model_forward(x_nchw, weight, bias, *, max_tile_b: int = 2048):
    """Forward pass of BasicModel: Flatten -> Linear -> softmax(-1).

    x_nchw: (B, C, H, W) float32
    weight: (in_features, outputs) float32  (transposed vs torch's (out, in))
    bias:   (outputs,) float32
    returns: (B, outputs) float32 probabilities
    """
    B = x_nchw.shape[0]
    in_features = math.prod(int(d) for d in x_nchw.shape[1:])
    outputs = weight.shape[1]

    # nn.Flatten (row-major, same as torch); keep native f32 for the HBM stream.
    x_flat = x_nchw.reshape(B, in_features).astype(jnp.float32)

    # Pad the batch only to a sublane multiple (<= 7 extra rows), never to tile_b.
    b8 = _round_up(B, 8)
    if b8 != B:
        x_flat = jnp.pad(x_flat, ((0, b8 - B), (0, 0)))
    tile_b = _pick_tile_b(b8, max_tile_b)

    # Lane-dense compute slab for W / bias (class dim padded to 128 lanes).
    out_pad = max(LANE, _round_up(outputs, LANE))
    w_pad = jnp.zeros((in_features, out_pad), jnp.float32)
    w_pad = w_pad.at[:, :outputs].set(weight.astype(jnp.float32))
    w_bf = w_pad.astype(jnp.bfloat16)
    b_pad_arr = jnp.full((1, out_pad), -1e30, jnp.float32)
    b_pad_arr = b_pad_arr.at[0, :outputs].set(bias.astype(jnp.float32))

    grid = (b8 // tile_b,)
    cost = pl.CostEstimate(
        flops=2 * b8 * in_features * out_pad,
        transcendentals=b8 * out_pad,
        bytes_accessed=(b8 * in_features * 4          # x stream (f32)
                        + in_features * out_pad * 2   # resident weight (bf16)
                        + out_pad * 4                 # bias (f32)
                        + b8 * outputs * 4),          # narrow output (f32)
    )

    out = pl.pallas_call(
        _linear_softmax_kernel,
        out_shape=jax.ShapeDtypeStruct((b8, outputs), jnp.float32),
        grid_spec=pltpu.PrefetchScalarGridSpec(
            num_scalar_prefetch=0,
            grid=grid,
            in_specs=[
                pl.BlockSpec((tile_b, in_features), lambda i: (i, 0)),   # x: streamed
                pl.BlockSpec((in_features, out_pad), lambda i: (0, 0)),  # W: resident
                pl.BlockSpec((1, out_pad), lambda i: (0, 0)),            # b: resident
            ],
            out_specs=pl.BlockSpec((tile_b, outputs), lambda i: (i, 0)),
        ),
        compiler_params=pltpu.CompilerParams(
            dimension_semantics=("parallel",),   # shard batch across v7x's 2 TCs
            vmem_limit_bytes=32 * 1024 * 1024,   # above v5e's 16 MiB default, < v7x's 64 MiB
        ),
        cost_estimate=cost,
    )(x_flat, w_bf, b_pad_arr)

    # Drop the (at most 7) sublane-padding rows.
    return out[:B]


def _reference_forward(x_nchw, weight, bias):
    B = x_nchw.shape[0]
    x = x_nchw.reshape(B, -1).astype(jnp.float32)
    logits = x @ weight.astype(jnp.float32) + bias.astype(jnp.float32)
    return jax.nn.softmax(logits, axis=-1)


if __name__ == "__main__":
    key = jax.random.PRNGKey(0)
    k_x, k_w, k_b = jax.random.split(key, 3)

    # MNIST-shaped input, small batch (what the module's forward implies).
    B, C, H, W = 2, 1, 28, 28
    outputs = 10
    in_features = C * H * W  # 784, what LazyLinear materializes

    x = jax.random.normal(k_x, (B, C, H, W), dtype=jnp.float32)

    # Deterministic init mimicking torch.nn.Linear: U(-1/sqrt(fan_in), 1/sqrt(fan_in)).
    bound = 1.0 / jnp.sqrt(jnp.float32(in_features))
    weight = jax.random.uniform(k_w, (in_features, outputs), jnp.float32, -bound, bound)
    bias = jax.random.uniform(k_b, (outputs,), jnp.float32, -bound, bound)

    probs = basic_model_forward(x, weight, bias)
    probs = jax.block_until_ready(probs)

    # Sanity: shape, rows sum to 1 (exact divide -> tight), close to f32 reference
    # (loose tolerance because the matmul operands are bf16).
    ref = _reference_forward(x, weight, bias)
    assert probs.shape == (B, outputs)
    assert bool(jnp.allclose(jnp.sum(probs, axis=-1), 1.0, atol=1e-4))
    assert bool(jnp.allclose(probs, ref, atol=2e-2))

    print("KERNEL_OK")
</pallas_src>

<mosaic_0001>
module attributes {stable_mosaic.version = 11 : i64} {
  func.func @_linear_softmax_kernel(%arg0: i32, %arg1: memref<8x784xf32, #tpu.memory_space<vmem>>, %arg2: memref<784x128xbf16, #tpu.memory_space<vmem>>, %arg3: memref<1x128xf32, #tpu.memory_space<vmem>>, %arg4: memref<8x10xf32, #tpu.memory_space<vmem>>) attributes {dimension_semantics = [#tpu.dimension_semantics<parallel>], iteration_bounds = array<i64: 1>, scalar_prefetch = 0 : i64, scratch_operands = 0 : i64, tpu.core_type = #tpu.core_type<tc>, window_params = [{transform_indices = @transform_0, window_bounds = array<i64: 8, 784>}, {pipeline_mode = #tpu.pipeline_mode<synchronous>, transform_indices = @transform_1, window_bounds = array<i64: 784, 128>}, {pipeline_mode = #tpu.pipeline_mode<synchronous>, transform_indices = @transform_2, window_bounds = array<i64: 1, 128>}, {transform_indices = @transform_3, window_bounds = array<i64: 8, 10>}]} {
    %c0 = arith.constant 0 : index
    %c0_0 = arith.constant 0 : index
    %0 = vector.load %arg1[%c0, %c0_0] : memref<8x784xf32, #tpu.memory_space<vmem>>, vector<8x784xf32>
    %1 = arith.truncf %0 : vector<8x784xf32> to vector<8x784xbf16>
    %c0_1 = arith.constant 0 : index
    %c0_2 = arith.constant 0 : index
    %2 = vector.load %arg2[%c0_1, %c0_2] : memref<784x128xbf16, #tpu.memory_space<vmem>>, vector<784x128xbf16>
    %cst = arith.constant dense<0.000000e+00> : vector<8x128xf32>
    %3 = tpu.matmul %1, %2, %cst {dimension_numbers = #tpu.dot_dimension_numbers<[1], [0], [0], [1], [0, 0, 1, 1], [], []>} : vector<8x784xbf16>, vector<784x128xbf16>, vector<8x128xf32> -> vector<8x128xf32>
    %c0_3 = arith.constant 0 : index
    %c0_4 = arith.constant 0 : index
    %4 = vector.load %arg3[%c0_3, %c0_4] : memref<1x128xf32, #tpu.memory_space<vmem>>, vector<1x128xf32>
    %5 = vector.broadcast %4 : vector<1x128xf32> to vector<8x128xf32>
    %6 = arith.addf %3, %5 : vector<8x128xf32>
    %cst_5 = arith.constant dense<0xFF800000> : vector<8xf32>
    %7 = vector.multi_reduction <maximumf>, %6, %cst_5 [1] : vector<8x128xf32> to vector<8xf32>
    %8 = vector.shape_cast %7 : vector<8xf32> to vector<8x1xf32>
    %9 = vector.broadcast %8 : vector<8x1xf32> to vector<8x128xf32>
    %10 = arith.subf %6, %9 : vector<8x128xf32>
    %11 = math.exp %10 : vector<8x128xf32>
    %cst_6 = arith.constant dense<0.000000e+00> : vector<8xf32>
    %12 = vector.multi_reduction <add>, %11, %cst_6 [1] : vector<8x128xf32> to vector<8xf32>
    %13 = vector.shape_cast %12 : vector<8xf32> to vector<8x1xf32>
    %14 = vector.broadcast %13 : vector<8x1xf32> to vector<8x128xf32>
    %15 = arith.divf %11, %14 : vector<8x128xf32>
    %16 = vector.extract_strided_slice %15 {offsets = [0, 0], sizes = [8, 10], strides = [1, 1]} : vector<8x128xf32> to vector<8x10xf32>
    %c0_7 = arith.constant 0 : index
    %c0_8 = arith.constant 0 : index
    %17 = vector.load %arg4[%c0_7, %c0_8] : memref<8x10xf32, #tpu.memory_space<vmem>>, vector<8x10xf32>
    tpu.vector_store %arg4[%c0_7, %c0_8], %16 {strides = array<i32>} : memref<8x10xf32, #tpu.memory_space<vmem>>, vector<8x10xf32>,
    return
  }
  func.func @transform_0(%arg0: i32) -> (i32, i32) {
    %c0_i32 = arith.constant 0 : i32
    %c0_i32_0 = arith.constant 0 : i32
    return %arg0, %c0_i32 : i32, i32
  }
  func.func @transform_1(%arg0: i32) -> (i32, i32) {
    %c0_i32 = arith.constant 0 : i32
    %c0_i32_0 = arith.constant 0 : i32
    %c0_i32_1 = arith.constant 0 : i32
    return %c0_i32, %c0_i32_0 : i32, i32
  }
  func.func @transform_2(%arg0: i32) -> (i32, i32) {
    %c0_i32 = arith.constant 0 : i32
    %c0_i32_0 = arith.constant 0 : i32
    %c0_i32_1 = arith.constant 0 : i32
    return %c0_i32, %c0_i32_0 : i32, i32
  }
  func.func @transform_3(%arg0: i32) -> (i32, i32) {
    %c0_i32 = arith.constant 0 : i32
    %c0_i32_0 = arith.constant 0 : i32
    return %arg0, %c0_i32 : i32, i32
  }
}

</mosaic_0001>

<bundles_post_ra>
// kernel: basic_model_forward.1
= control target key start
LH: loop header
LB: loop body
LE: loop exit
PB: predicated region body
PF: predicated region fallthrough
CT: control target
= control target key end

     0   :  { %v787_v44 = vmov 0.0   ;;  %vm788_vm0 = vmmov 0   ;;  %vm428_vm1 = vcmask 130048   ;;  %vm601_vm2 = vcmask 80896   ;;  %s983_s1 = inlined_call_operand.vmem [shape: bf16[784,128], index: 1, kind: input, shape index: {}]   ;;  %s984_s0 = inlined_call_operand.vmem [shape: f32[8,784], index: 0, kind: input, shape index: {}]   ;;  %s985_s2 = inlined_call_operand.vmem [shape: f32[1,128], index: 2, kind: input, shape index: {}]   ;;  %s986_s3 = inlined_call_operand.vmem [shape: f32[8,10], index: 3, kind: output, shape index: {}]  }
   0x1   :  { %v734_v0 = vld [vmem:[%s983_s1 + $0x40] sm:$0xff]   ;;  %v738_v4 = vld [vmem:[%s983_s1 + $0x48] sm:$0xff]   ;;  %v742_v8 = vld [vmem:[%s983_s1 + $0x50] sm:$0xff]  }
   0x2   :  { %v735_v1 = vld [vmem:[%s983_s1] sm:$0xff]   ;;  %658 = vmatprep.subr.bf16.mxu0 %v734_v0  ;;  %v739_v5 = vld [vmem:[%s983_s1 + $0x8] sm:$0xff]   ;;  %v743_v9 = vld [vmem:[%s983_s1 + $0x10] sm:$0xff]  }
   0x3   :  { %v736_v2 = vld [vmem:[%s983_s1 + $0xc0] sm:$0xff]   ;;  %659 = vmatpush3.bf16.msra.mxu0 %v735_v1  ;;  %v740_v6 = vld [vmem:[%s983_s1 + $0xc8] sm:$0xff]   ;;  %v744_v10 = vld [vmem:[%s983_s1 + $0xd0] sm:$0xff]  }
   0x4   :  { %v737_v3 = vld [vmem:[%s983_s1 + $0x80] sm:$0xff]   ;;  %680 = vmatprep.subr.bf16.mxu1 %v736_v2  ;;  %660 = vmatprep.subr.bf16.mxu0 %v738_v4  ;;  %v741_v7 = vld [vmem:[%s983_s1 + $0x88] sm:$0xff]   ;;  %v745_v11 = vld [vmem:[%s983_s1 + $0x90] sm:$0xff]  }
   0x5   :  { %681 = vmatpush3.bf16.msra.mxu1 %v737_v3  ;;  %v746_v12 = vld [vmem:[%s983_s1 + $0x58] sm:$0xff]   ;;  %v750_v16 = vld [vmem:[%s983_s1 + $0x60] sm:$0xff]   ;;  %v754_v20 = vld [vmem:[%s983_s1 + $0x68] sm:$0xff]  }
   0x6   :  { %682 = vmatprep.subr.bf16.mxu1 %v740_v6  ;;  %v747_v13 = vld [vmem:[%s983_s1 + $0x18] sm:$0xff]   ;;  %v751_v17 = vld [vmem:[%s983_s1 + $0x20] sm:$0xff]   ;;  %v755_v21 = vld [vmem:[%s983_s1 + $0x28] sm:$0xff]  }
   0x7   :  { %661 = vmatpush3.bf16.msra.mxu0 %v739_v5  ;;  %v748_v14 = vld [vmem:[%s983_s1 + $0xd8] sm:$0xff]   ;;  %v752_v18 = vld [vmem:[%s983_s1 + $0xe0] sm:$0xff]   ;;  %v756_v22 = vld [vmem:[%s983_s1 + $0xe8] sm:$0xff]  }
   0x8   :  { %662 = vmatprep.subr.bf16.mxu0 %v742_v8  ;;  %v749_v15 = vld [vmem:[%s983_s1 + $0x98] sm:$0xff]   ;;  %v753_v19 = vld [vmem:[%s983_s1 + $0xa0] sm:$0xff]   ;;  %v757_v23 = vld [vmem:[%s983_s1 + $0xa8] sm:$0xff]  }
   0x9   :  { %683 = vmatpush3.bf16.msra.mxu1 %v741_v7  ;;  %v758_v24 = vld [vmem:[%s983_s1 + $0x70] sm:$0xff]   ;;  %v762_v28 = vld [vmem:[%s983_s1 + $0x78] sm:$0xff]   ;;  %v16_v31 = vld [vmem:[%s984_s0 + $0x8] sm:$0xff] }
   0xa   :  { %684 = vmatprep.subr.bf16.mxu1 %v744_v10  ;;  %v759_v25 = vld [vmem:[%s983_s1 + $0x30] sm:$0xff]   ;;  %v763_v29 = vld [vmem:[%s983_s1 + $0x38] sm:$0xff]   ;;  %v23_v32 = vpack.c.bf16 %v16_v31, %v16_v31  ;;  %v15_v34 = vld [vmem:[%s984_s0] sm:$0xff] }
   0xb   :  { %663 = vmatpush3.bf16.msra.mxu0 %v743_v9  ;;  %v760_v26 = vld [vmem:[%s983_s1 + $0xf0] sm:$0xff]   ;;  %v764_v30 = vld [vmem:[%s983_s1 + $0xf8] sm:$0xff]   ;;  %v22_v35 = vpack.c.bf16 %v15_v34, %v15_v34  ;;  %v766_v36 = vld [vmem:[%s983_s1 + $0x140] sm:$0xff]  }
   0xc   :  { %664 = vmatprep.subr.bf16.mxu0 %v746_v12  ;;  %v761_v27 = vld [vmem:[%s983_s1 + $0xb0] sm:$0xff]   ;;  %v765_v33 = vld [vmem:[%s983_s1 + $0xb8] sm:$0xff]   ;;  %464 = vmatprep.mubr.bf16.mxu0 %v23_v32  ;;  %v767_v39 = vld [vmem:[%s983_s1 + $0x100] sm:$0xff]  }
   0xd   :  { %685 = vmatpush3.bf16.msra.mxu1 %v745_v11  ;;  %v18_v37 = vld [vmem:[%s984_s0 + $0x18] sm:$0xff]  ;;  %v17_v40 = vld [vmem:[%s984_s0 + $0x10] sm:$0xff]  ;;  %v768_v42 = vld [vmem:[%s983_s1 + $0x148] sm:$0xff]  }
   0xe   :  { %686 = vmatprep.subr.bf16.mxu1 %v748_v14  ;;  %v25_v38 = vpack.c.bf16 %v18_v37, %v18_v37  ;;  %v24_v41 = vpack.c.bf16 %v17_v40, %v17_v40  ;;  %v769_v43 = vld [vmem:[%s983_s1 + $0x108] sm:$0xff]   ;;  %v770_v45 = vld [vmem:[%s983_s1 + $0x150] sm:$0xff]   ;;  %v772_v47 = vld [vmem:[%s983_s1 + $0x158] sm:$0xff]  }
   0xf   :  { %665 = vmatpush3.bf16.msra.mxu0 %v747_v13  ;;  %v771_v46 = vld [vmem:[%s983_s1 + $0x110] sm:$0xff]   ;;  %v773_v48 = vld [vmem:[%s983_s1 + $0x118] sm:$0xff]   ;;  %v774_v49 = vld [vmem:[%s983_s1 + $0x160] sm:$0xff]  }
  0x10   :  { %666 = vmatprep.subr.bf16.mxu0 %v750_v16  ;;  %504 = vmatprep.mubr.bf16.mxu1 %v25_v38  ;;  %v775_v50 = vld [vmem:[%s983_s1 + $0x120] sm:$0xff]   ;;  %v776_v51 = vld [vmem:[%s983_s1 + $0x168] sm:$0xff]   ;;  %v21_v55 = vld [vmem:[%s984_s0 + $0x30] sm:$0xff] }
  0x11   :  { %687 = vmatpush3.bf16.msra.mxu1 %v749_v15  ;;  %v782_v52 = vld [vmem:[%s983_s1 + $0x180] sm:$0xff]   ;;  %v20_v53 = vld [vmem:[%s984_s0 + $0x28] sm:$0xff]  ;;  %v28_v57 = vpack.c.bf16 %v21_v55, %v21_v55  ;;  %v778_v58 = vld [vmem:[%s983_s1 + $0x170] sm:$0xff]  }
  0x12   :  { %688 = vmatprep.subr.bf16.mxu1 %v752_v18  ;;  %v27_v54 = vpack.c.bf16 %v20_v53, %v20_v53  ;;  %v777_v56 = vld [vmem:[%s983_s1 + $0x128] sm:$0xff]   ;;  %v779_v59 = vld [vmem:[%s983_s1 + $0x130] sm:$0xff]   ;;  %v780_v60 = vld [vmem:[%s983_s1 + $0x178] sm:$0xff]  }
  0x13   :  { %667 = vmatpush3.bf16.msra.mxu0 %v751_v17  ;;  %v781_v61 = vld [vmem:[%s983_s1 + $0x138] sm:$0xff]   ;;  %v19_v62 = vld [vmem:[%s984_s0 + $0x20] sm:$0xff] }
  0x14   :  { %668 = vmatprep.subr.bf16.mxu0 %v754_v20  ;;  %v26_v63 = vpack.c.bf16 %v19_v62, %v19_v62  ;;  %v607_v1 = vld [vmem:[%s985_s2] ss:$0 sm:$0xff] }
  0x15   :  { %689 = vmatpush3.bf16.msra.mxu1 %v753_v19 }
  0x16   :  { %690 = vmatprep.subr.bf16.mxu1 %v756_v22 }
  0x17   :  { %669 = vmatpush3.bf16.msra.mxu0 %v755_v21 }
  0x18   :  { %670 = vmatprep.subr.bf16.mxu0 %v758_v24 }
  0x19   :  { %691 = vmatpush3.bf16.msra.mxu1 %v757_v23 }
  0x1a   :  { %692 = vmatprep.subr.bf16.mxu1 %v760_v26 }
  0x1b   :  { %671 = vmatpush3.bf16.msra.mxu0 %v759_v25 }
  0x1c   :  { %672 = vmatprep.subr.bf16.mxu0 %v762_v28 }
  0x1d   :  { %693 = vmatpush3.bf16.msra.mxu1 %v761_v27 }
  0x1e   :  { %694 = vmatprep.subr.bf16.mxu1 %v764_v30 }
  0x1f   :  { %673 = vmatpush3.bf16.msra.mxu0 %v763_v29 }
  0x20   :  { %702 = vmatprep.subr.bf16.mxu0 %v766_v36 }
  0x21   :  { %695 = vmatpush3.bf16.msra.mxu1 %v765_v33 }
  0x22   :  { %465 = vmatmul.mubr.bf16.vlgmr.msra.gmra.mrb[0].mxu0 %v22_v35  ;;  %726 = vmatprep.subr.bf16.mxu1 %v787_v44 }
  0x23   :  { %703 = vmatpush3.bf16.msra.mxu0 %v767_v39  ;;  %544 = vmatprep.mubr.bf16.mxu0 %v27_v54 }
  0x24   :  { %505 = vmatmul.mubr.bf16.vlgmr.msra.gmra.mrb[0].mxu1 %v24_v41  ;;  %704 = vmatprep.subr.bf16.mxu0 %v768_v42 }
  0x25   :  { %728 = vmatprep.mubr.msk.bf16.mxu1 %vm788_vm0, %v787_v44  ;;  %727 = vmatpush3.bf16.msra.mxu1 %v782_v52 }
  0x27   :  { %705 = vmatpush3.bf16.msra.mxu0 %v769_v43 }
  0x28   :  { %706 = vmatprep.subr.bf16.mxu0 %v770_v45 }
  0x2b   :  { %707 = vmatpush3.bf16.msra.mxu0 %v771_v46 }
  0x2c   :  { %708 = vmatprep.subr.bf16.mxu0 %v772_v47  ;;  %729 = vmatmul.mubr.msk.bf16.vlgmr.msra.gmra.mrb[4].mxu1 %vm428_vm1, %v28_v57 }
  0x2f   :  { %709 = vmatpush3.bf16.msra.mxu0 %v773_v48 }
  0x30   :  { %710 = vmatprep.subr.bf16.mxu0 %v774_v49 }
  0x33   :  { %711 = vmatpush3.bf16.msra.mxu0 %v775_v50 }
  0x34   :  { %712 = vmatprep.subr.bf16.mxu0 %v776_v51 }
  0x37   :  { %713 = vmatpush3.bf16.msra.mxu0 %v777_v56 }
  0x38   :  { %714 = vmatprep.subr.bf16.mxu0 %v778_v58 }
  0x3b   :  { %715 = vmatpush3.bf16.msra.mxu0 %v779_v59 }
  0x3c   :  { %716 = vmatprep.subr.bf16.mxu0 %v780_v60 }
  0x3f   :  { %717 = vmatpush3.bf16.msra.mxu0 %v781_v61 }
  0x42   :  { %545 = vmatmul.mubr.bf16.vlgmr.msra.gmra.mrb[4].mxu0 %v26_v63 }
  0xf5   :  { %v674_v0 = vpop.f32.mrb[0].mxu0 }
  0xf6   :  { %v675_v2 = vpop.f32.mrb[1].mxu0 }
  0xf7   :  { %v676_v3 = vadd.f32 %v675_v2, %v674_v0  ;;  %v677_v4 = vpop.f32.mrb[2].mxu0  ;;  %v696_v5 = vpop.f32.mrb[0].mxu1 }
  0xf8   :  { %v678_v6 = vpop.f32.mrb[3].mxu0  ;;  %v697_v8 = vpop.f32.mrb[1].mxu1 }
  0xf9   :  { %v467_v7 = vadd.f32 %v676_v3, %v607_v1  ;;  %v698_v9 = vadd.f32 %v697_v8, %v696_v5  ;;  %v699_v10 = vpop.f32.mrb[2].mxu1 }
  0xfa   :  { %v700_v11 = vpop.f32.mrb[3].mxu1 }
  0xfb   :  { %v507_v12 = vadd.f32 %v698_v9, %v467_v7 }
  0xff   :  { %v586_v13 = vpop.f32.mrb[4].mxu1 }
 0x100   :  { %v730_v14 = vpop.f32.mrb[5].mxu1 }
 0x101   :  { %v589_v15 = vpop.f32.mrb[6].mxu1 }
 0x102   :  { %v731_v16 = vpop.f32.mrb[7].mxu1 }
 0x115   :  { %v718_v17 = vpop.f32.mrb[4].mxu0 }
 0x116   :  { %v719_v18 = vpop.f32.mrb[5].mxu0 }
 0x117   :  { %v720_v19 = vadd.f32 %v719_v18, %v718_v17  ;;  %v721_v20 = vpop.f32.mrb[6].mxu0 }
 0x118   :  { %v722_v21 = vpop.f32.mrb[7].mxu0 }
 0x119   :  { %v547_v22 = vadd.f32 %v720_v19, %v507_v12 }
 0x11b   :  { %v587_v23 = vadd.f32 %v586_v13, %v547_v22 }
 0x11d   :  { %592 = vmax.xlane.f32.xlu0 %v587_v23 }
 0x1aa   :  { %v593_v24 = vpop.xlane.xlu0 %592 }
 0x1ab   :  { %v594_v25 = vsub.f32 %v587_v23, %v593_v24 }
 0x1ad   :  { %v595_v26 = vmul.f32 1.442695, %v594_v25 }
 0x1af   :  { %783 = vpow2.f32 %v595_v26 }
 0x1b9   :  { %v784_v27 = vpop.eup %783 }
 0x1ba   :  { %597 = vadd.xlane.f32.xlu0 %v784_v27 }
 0x247   :  { %v598_v28 = vpop.xlane.xlu0 %597 }
 0x248   :  { %785 = vrcp.f32 %v598_v28 }
 0x252   :  { %v786_v29 = vpop.eup %785 }
 0x253   :  { %v600_v30 = vmul.f32 %v786_v29, %v784_v27 }
 0x255   :  { %602 = vst.msk [vmem:[%s986_s3] sm:$0xff] %vm601_vm2, %v600_v30 }

</bundles_post_ra>
